<compile_context>
chip_gen: v7x
topology: tpu7x:2x2x1
jax: 0.10.0
libtpu: 0.0.40
codegen_flags: <defaults>
</compile_context>

<pallas_src>
import functools

import jax
import jax.numpy as jnp
from jax.experimental import pallas as pl
from jax.experimental.pallas import tpu as pltpu


_VMEM_LIMIT = 32 * 1024 * 1024          # portable scoped-VMEM budget (v7x: 64 MiB phys)
_RESIDENT_XW_BYTES = 8 * 1024 * 1024    # keep XW fully VMEM-resident below this size


# ------------------------------ helpers --------------------------------------

def _round_up(x, m):
    return ((x + m - 1) // m) * m


def _pad2d(x, rows, cols, dtype=None):
    dtype = x.dtype if dtype is None else dtype
    out = jnp.zeros((rows, cols), dtype)
    return out.at[: x.shape[0], : x.shape[1]].set(x.astype(dtype))


def _pick_div(n, candidates):
    """Largest candidate that divides n (n is always a multiple of 128)."""
    for c in candidates:
        if n % c == 0:
            return c
    return n


def _pick_tm(np_):
    """Row tile: as large as possible, but keep >= 2 row blocks when we can so
    the 'parallel' i axis can shard across both v7x TensorCores."""
    for c in (512, 256, 128):
        if np_ % c == 0 and np_ // c >= 2:
            return c
    return _pick_div(np_, (512, 256, 128))


def _pick_tn(dp):
    """Output-column tile: cover the full padded width (A_hat read once) up to
    a 1024-lane cap; dp is always a multiple of 128."""
    if dp <= 1024:
        return dp
    return _pick_div(dp, (1024, 512, 256, 128))


# ----------------------------- Pallas kernels --------------------------------

def _xw_kernel(x_ref, w_ref, o_ref):
    """Row tile of X @ W (bf16 x bf16 -> f32 accumulate), stored as bf16."""
    o_ref[...] = jnp.dot(
        x_ref[...], w_ref[...], preferred_element_type=jnp.float32
    ).astype(o_ref.dtype)


def _aggregate_kernel(a_ref, xw_ref, b_ref, o_ref, acc_ref, *,
                      apply_act, resident_xw, tk, tn):
    """One (i, j, k) tile of act(A_hat @ XW + b) with f32 accumulation.

    a_ref:  (tm, tk) bf16
    xw_ref: (Np, Dp) bf16 if resident_xw else (tk, tn) bf16
    b_ref:  (1, tn)  f32
    o_ref:  (tm, tn) bf16 / f32
    acc_ref:(tm, tn) f32 scratch (resident across the k axis)
    """
    k = pl.program_id(2)

    @pl.when(k == 0)
    def _():
        acc_ref[...] = jnp.zeros_like(acc_ref)

    if resident_xw:
        j = pl.program_id(1)
        row = pl.multiple_of(k * tk, tk)
        col = pl.multiple_of(j * tn, tn)
        xw_blk = xw_ref[pl.ds(row, tk), pl.ds(col, tn)]
    else:
        xw_blk = xw_ref[...]

    acc_ref[...] += jnp.dot(
        a_ref[...], xw_blk, preferred_element_type=jnp.float32
    )

    @pl.when(k == pl.num_programs(2) - 1)
    def _():
        h = acc_ref[...] + b_ref[...]
        if apply_act:
            h = jnp.maximum(h, 0.0)  # relu (epilogue only)
        o_ref[...] = h.astype(o_ref.dtype)


# ----------------------------- kernel wrappers --------------------------------

def xw_matmul(x_pad, w_pad):
    """(Np, Dinp) bf16 @ (Dinp, Dp) bf16 -> (Np, Dp) bf16, row-tiled, W resident."""
    Np, Dinp = x_pad.shape
    Dp = w_pad.shape[1]
    tmx = _pick_div(Np, (512, 256, 128))
    return pl.pallas_call(
        _xw_kernel,
        out_shape=jax.ShapeDtypeStruct((Np, Dp), jnp.bfloat16),
        grid_spec=pltpu.PrefetchScalarGridSpec(
            num_scalar_prefetch=0,
            grid=(Np // tmx,),
            in_specs=[
                pl.BlockSpec((tmx, Dinp), lambda i: (i, 0)),
                pl.BlockSpec((Dinp, Dp), lambda i: (0, 0)),   # resident weight
            ],
            out_specs=pl.BlockSpec((tmx, Dp), lambda i: (i, 0)),
        ),
        compiler_params=pltpu.CompilerParams(
            dimension_semantics=("parallel",),
            vmem_limit_bytes=_VMEM_LIMIT,
        ),
    )(x_pad, w_pad)


def aggregate(a_pad, xw_pad, b_pad, *, apply_act, out_dtype):
    """act(A_hat @ XW + b), tiled over (rows, cols, reduction)."""
    Np = a_pad.shape[0]
    Dp = xw_pad.shape[1]
    tm = _pick_tm(Np)
    tk = _pick_div(Np, (512, 256, 128))
    tn = _pick_tn(Dp)
    resident_xw = (Np * Dp * 2) <= _RESIDENT_XW_BYTES

    if resident_xw:
        # Constant block index -> DMA'd into VMEM exactly once for the whole grid.
        xw_spec = pl.BlockSpec((Np, Dp), lambda i, j, k: (0, 0))
    else:
        xw_spec = pl.BlockSpec((tk, tn), lambda i, j, k: (k, j))

    grid = (Np // tm, Dp // tn, Np // tk)
    return pl.pallas_call(
        functools.partial(_aggregate_kernel, apply_act=apply_act,
                          resident_xw=resident_xw, tk=tk, tn=tn),
        out_shape=jax.ShapeDtypeStruct((Np, Dp), out_dtype),
        grid_spec=pltpu.PrefetchScalarGridSpec(
            num_scalar_prefetch=0,
            grid=grid,
            in_specs=[
                pl.BlockSpec((tm, tk), lambda i, j, k: (i, k)),
                xw_spec,
                pl.BlockSpec((1, tn), lambda i, j, k: (0, j)),
            ],
            out_specs=pl.BlockSpec((tm, tn), lambda i, j, k: (i, j)),
            scratch_shapes=[pltpu.VMEM((tm, tn), jnp.float32)],
        ),
        compiler_params=pltpu.CompilerParams(
            dimension_semantics=("parallel", "parallel", "arbitrary"),
            vmem_limit_bytes=_VMEM_LIMIT,
        ),
    )(a_pad, xw_pad, b_pad.reshape(1, Dp))


# ------------------------------ JAX glue --------------------------------------

def build_normalized_adjacency_padded(edge_index, num_nodes, num_nodes_pad,
                                       edge_weight=None, dtype=jnp.bfloat16):
    """Dense A_hat = D^-1/2 (A + I) D^-1/2 built directly at padded size,
    streamed to the kernel as bf16 (PyG gcn_norm semantics)."""
    # TODO(synk): sparse (scalar-prefetch CSR gather) formulation for large
    #             graphs not implemented; dense normalized adjacency is used.
    src, dst = edge_index[0], edge_index[1]
    if edge_weight is None:
        edge_weight = jnp.ones(src.shape[0], dtype=jnp.float32)

    loop = jnp.arange(num_nodes, dtype=src.dtype)
    src = jnp.concatenate([src, loop])
    dst = jnp.concatenate([dst, loop])
    ew = jnp.concatenate([edge_weight.astype(jnp.float32),
                          jnp.ones(num_nodes, dtype=jnp.float32)])

    deg = jnp.zeros(num_nodes, dtype=jnp.float32).at[dst].add(ew)
    dinv = jnp.where(deg > 0, 1.0 / jnp.sqrt(deg), 0.0)
    norm = dinv[src] * ew * dinv[dst]

    # A_hat[i, j] = weight of message j -> i (row = target, col = source)
    a_hat = jnp.zeros((num_nodes_pad, num_nodes_pad), dtype=jnp.float32)
    a_hat = a_hat.at[dst, src].add(norm)
    return a_hat.astype(dtype)


def glorot(key, shape):
    fan_in, fan_out = shape
    limit = jnp.sqrt(6.0 / (fan_in + fan_out))
    return jax.random.uniform(key, shape, jnp.float32, -limit, limit)


def init_gcn_encoder_params(key, input_dim, layer_num, hidden_size, output_dim):
    dims = []
    if layer_num > 1:
        dims.append((input_dim, hidden_size))
        for _ in range(layer_num - 2):
            dims.append((hidden_size, hidden_size))
        dims.append((hidden_size, output_dim))
    else:
        dims.append((input_dim, output_dim))

    params = []
    for i, (din, dout) in enumerate(dims):
        k = jax.random.fold_in(key, i)
        w = glorot(k, (din, dout))
        b = jnp.zeros((dout,), jnp.float32)
        params.append((w, b))
    return params


def gcn_encoder_forward(params, x, edge_index, edge_weight=None,
                        *, last_activation=True):
    """Returns (x_out, trace) exactly like GCN_Encoder.forward (norm='id',
    eval-mode dropout == identity)."""
    # TODO(synk): training-mode dropout (stateful RNG mask) not implemented;
    #             eval semantics (identity) used, matching model.eval().
    N, Din = x.shape
    Np = _round_up(N, 128)                      # pad only to tile granularity
    a_pad = build_normalized_adjacency_padded(edge_index, N, Np, edge_weight,
                                               dtype=jnp.bfloat16)

    Dinp = _round_up(Din, 128)
    h_pad = _pad2d(x, Np, Dinp, jnp.bfloat16)   # activations stream as bf16

    layer_num = len(params)
    trace = []
    out = None
    for i, (w, b) in enumerate(params):
        din, dout = w.shape
        dinp, dp = _round_up(din, 128), _round_up(dout, 128)
        w_pad = _pad2d(w, dinp, dp, jnp.bfloat16)
        b_pad = jnp.zeros((dp,), jnp.float32).at[:dout].set(b)

        xw = xw_matmul(h_pad, w_pad)                              # (Np, dp) bf16
        is_last = (i == layer_num - 1)
        apply_act = not (is_last and not last_activation)
        out_dtype = jnp.float32 if is_last else jnp.bfloat16
        h_pad = aggregate(a_pad, xw, b_pad,
                          apply_act=apply_act, out_dtype=out_dtype)

        out = h_pad[:N, :dout].astype(jnp.float32)
        trace.append(out)
        # dropout (eval) == identity; h_pad (bf16 for non-final layers) feeds
        # the next layer directly.  Padded rows of h_pad hold relu(bias) junk,
        # but A_hat's zero padded columns annihilate their contribution to all
        # real rows in the next layer, so real outputs stay exact.
    return out, jnp.stack(trace, axis=0)


# ------------------------- pure-JAX reference (f32) --------------------------

def _reference_forward(params, x, edge_index, edge_weight=None,
                       *, last_activation=True):
    N = x.shape[0]
    src, dst = edge_index[0], edge_index[1]
    ew = jnp.ones(src.shape[0], jnp.float32) if edge_weight is None else edge_weight
    loop = jnp.arange(N, dtype=src.dtype)
    src = jnp.concatenate([src, loop])
    dst = jnp.concatenate([dst, loop])
    ew = jnp.concatenate([ew, jnp.ones(N, jnp.float32)])
    deg = jnp.zeros(N, jnp.float32).at[dst].add(ew)
    dinv = jnp.where(deg > 0, 1.0 / jnp.sqrt(deg), 0.0)
    a_hat = jnp.zeros((N, N), jnp.float32).at[dst, src].add(dinv[src] * ew * dinv[dst])

    h = x.astype(jnp.float32)
    trace = []
    for i, (w, b) in enumerate(params):
        h = a_hat @ (h @ w) + b
        if not (i == len(params) - 1 and not last_activation):
            h = jnp.maximum(h, 0.0)
        trace.append(h)
    return h, jnp.stack(trace, axis=0)


# ------------------------------- main ----------------------------------------

if __name__ == "__main__":
    key = jax.random.PRNGKey(0)

    # Small deterministic synthetic graph
    N = 32          # nodes
    E = 64          # edges
    input_dim = 16
    hidden_size = 32
    output_dim = 32     # == hidden_size so jnp.stack(trace) works (as with torch.stack)
    layer_num = 2

    kx, ke, kp = jax.random.split(key, 3)
    x = jax.random.normal(kx, (N, input_dim), jnp.float32)
    edge_index = jax.random.randint(ke, (2, E), 0, N, dtype=jnp.int32)

    params = init_gcn_encoder_params(kp, input_dim, layer_num,
                                     hidden_size, output_dim)

    out, trace = gcn_encoder_forward(params, x, edge_index, None,
                                     last_activation=True)
    out = jax.block_until_ready(out)
    trace = jax.block_until_ready(trace)

    assert out.shape == (N, output_dim)
    assert trace.shape == (layer_num, N, output_dim)
    assert bool(jnp.all(jnp.isfinite(out)))

    # Loose-tolerance check vs f32 reference (bf16 streaming => ~1e-2 drift).
    ref_out, ref_trace = _reference_forward(params, x, edge_index, None,
                                            last_activation=True)
    assert bool(jnp.max(jnp.abs(out - ref_out)) < 0.1)
    assert bool(jnp.max(jnp.abs(trace - ref_trace)) < 0.1)

    print("KERNEL_OK")
</pallas_src>

<mosaic_0001>
module attributes {stable_mosaic.version = 11 : i64} {
  func.func @_xw_kernel(%arg0: i32, %arg1: memref<128x128xbf16, #tpu.memory_space<vmem>>, %arg2: memref<128x128xbf16, #tpu.memory_space<vmem>>, %arg3: memref<128x128xbf16, #tpu.memory_space<vmem>>) attributes {dimension_semantics = [#tpu.dimension_semantics<parallel>], iteration_bounds = array<i64: 1>, scalar_prefetch = 0 : i64, scratch_operands = 0 : i64, tpu.core_type = #tpu.core_type<tc>, window_params = [{transform_indices = @transform_0, window_bounds = array<i64: 128, 128>}, {pipeline_mode = #tpu.pipeline_mode<synchronous>, transform_indices = @transform_1, window_bounds = array<i64: 128, 128>}, {transform_indices = @transform_2, window_bounds = array<i64: 128, 128>}]} {
    %c0 = arith.constant 0 : index
    %c0_0 = arith.constant 0 : index
    %0 = vector.load %arg1[%c0, %c0_0] : memref<128x128xbf16, #tpu.memory_space<vmem>>, vector<128x128xbf16>
    %c0_1 = arith.constant 0 : index
    %c0_2 = arith.constant 0 : index
    %1 = vector.load %arg2[%c0_1, %c0_2] : memref<128x128xbf16, #tpu.memory_space<vmem>>, vector<128x128xbf16>
    %cst = arith.constant dense<0.000000e+00> : vector<128x128xf32>
    %2 = tpu.matmul %0, %1, %cst {dimension_numbers = #tpu.dot_dimension_numbers<[1], [0], [0], [1], [0, 0, 1, 1], [], []>} : vector<128x128xbf16>, vector<128x128xbf16>, vector<128x128xf32> -> vector<128x128xf32>
    %3 = arith.truncf %2 : vector<128x128xf32> to vector<128x128xbf16>
    %c0_3 = arith.constant 0 : index
    %c0_4 = arith.constant 0 : index
    %4 = vector.load %arg3[%c0_3, %c0_4] : memref<128x128xbf16, #tpu.memory_space<vmem>>, vector<128x128xbf16>
    tpu.vector_store %arg3[%c0_3, %c0_4], %3 {strides = array<i32>} : memref<128x128xbf16, #tpu.memory_space<vmem>>, vector<128x128xbf16>,
    return
  }
  func.func @transform_0(%arg0: i32) -> (i32, i32) {
    %c0_i32 = arith.constant 0 : i32
    %c0_i32_0 = arith.constant 0 : i32
    return %arg0, %c0_i32 : i32, i32
  }
  func.func @transform_1(%arg0: i32) -> (i32, i32) {
    %c0_i32 = arith.constant 0 : i32
    %c0_i32_0 = arith.constant 0 : i32
    %c0_i32_1 = arith.constant 0 : i32
    return %c0_i32, %c0_i32_0 : i32, i32
  }
  func.func @transform_2(%arg0: i32) -> (i32, i32) {
    %c0_i32 = arith.constant 0 : i32
    %c0_i32_0 = arith.constant 0 : i32
    return %arg0, %c0_i32 : i32, i32
  }
}

</mosaic_0001>

<bundles_post_ra>
// kernel: tpu_custom_call.1
= control target key start
LH: loop header
LB: loop body
LE: loop exit
PB: predicated region body
PF: predicated region fallthrough
CT: control target
= control target key end

     0   :  { %7 = vsyncpa [#allocation3], 0  ;;  %s681_s0 = inlined_call_operand.hbm [shape: bf16[128,128], index: 0, kind: input, shape index: {}]   ;;  %s682_s1 = inlined_call_operand.hbm [shape: bf16[128,128], index: 1, kind: input, shape index: {}]   ;;  %s683_s2 = inlined_call_operand.hbm [shape: bf16[128,128], index: 2, kind: output, shape index: {}]  }
   0x1   :  { %8 = vsyncpa [#allocation6], 0 }
   0x2   :  { %9 = vsyncpa [#allocation4], 0  ;;  %s616_s9 = smov [#allocation2]   ;;  %s544_s13 = scalar_lea.hbm %s681_s0, 1024 }
   0x3   :  { %s15_s10 = sshll.u32 %s616_s9, 4  ;;  %p545_p0 = scmp.ne.s32.totalorder %s681_s0, %s544_s13  ;;  %s16_s10 = int_to_ptr.vmem [resolvable:$true] %s15_s10 }
   0x4   :  { %p548_p1 = scmp.lt.u32.totalorder %s544_s13, %s681_s0 }
   0x6   :  { %p550_p2 = pnand %p548_p1, %p545_p0 }
   0x8   :  { %553 = shalt.err (!%p550_p2)
}
   0x9   :  { %s554_s18 = scalar_lea.vmem %s16_s10, 1024  ;;  %p559_p4 = scmp.lt.s32.totalorder %s16_s10, %s16_s10 }
   0xa   :  { %p555_p3 = scmp.ne.s32.totalorder %s16_s10, %s554_s18  ;;  %p560_p5 = scmp.lt.s32.totalorder %s554_s18, %s554_s18 }
   0xc   :  { %p561_p6 = por %p560_p5, %p559_p4 }
   0xe   :  { %p562_p7 = pnand %p561_p6, %p555_p3 }
  0x10   :  { %565 = shalt.err (!%p562_p7)
}
  0x11   :  { %s617_s19 = smov 64   ;;  %s618_s20 = smov 4  }
  0x12   :  { %21 = dma.hbm_to_vmem [thread:$0]  %s681_s0, 1024, %s16_s10, [#allocation3], %s617_s19, %s617_s19, %s618_s20  }
  0x13   :  { %s619_s23 = smov [#allocation5]   ;;  %s566_s27 = scalar_lea.hbm %s682_s1, 1024 }
  0x14   :  { %s27_s24 = sshll.u32 %s619_s23, 4  ;;  %p567_p8 = scmp.ne.s32.totalorder %s682_s1, %s566_s27  ;;  %s28_s24 = int_to_ptr.vmem [resolvable:$true] %s27_s24 }
  0x15   :  { %p570_p9 = scmp.lt.u32.totalorder %s566_s27, %s682_s1 }
  0x17   :  { %p572_p10 = pnand %p570_p9, %p567_p8 }
  0x19   :  { %575 = shalt.err (!%p572_p10)
}
  0x1a   :  { %s576_s4 = scalar_lea.vmem %s28_s24, 1024  ;;  %p581_p12 = scmp.lt.s32.totalorder %s28_s24, %s28_s24 }
  0x1b   :  { %p577_p11 = scmp.ne.s32.totalorder %s28_s24, %s576_s4  ;;  %p582_p13 = scmp.lt.s32.totalorder %s576_s4, %s576_s4 }
  0x1d   :  { %p583_p0 = por %p582_p13, %p581_p12 }
  0x1f   :  { %p584_p1 = pnand %p583_p0, %p577_p11 }
  0x21   :  { %587 = shalt.err (!%p584_p1)
}
  0x22   :  { %33 = dma.hbm_to_vmem [thread:$0]  %s682_s1, 1024, %s28_s24, [#allocation6], %s617_s19, %s617_s19, %s618_s20  }
  0x23   :  { %610 = dma.done.wait [#allocation3], 1024  }
  0x24   :  { %611 = vsyncadd [#allocation3], 4294966272 }
  0x25   :  { %612 = dma.done.wait [#allocation6], 1024  }
  0x26   :  { %613 = vsyncadd [#allocation6], 4294966272  ;;  %v528_v0 = vld [vmem:[#allocation5] sm:$0xff]   ;;  %v529_v1 = vld [vmem:[#allocation5 + $0x8] sm:$0xff]   ;;  %s620_s1 = smov [#allocation7]  }
  0x27   :  { %475 = vmatprep.subr.bf16.mxu0 %v528_v0  ;;  %507 = vmatprep.subr.bf16.mxu1 %v528_v0  ;;  %v530_v2 = vld [vmem:[#allocation5 + $0x10] sm:$0xff]   ;;  %v531_v3 = vld [vmem:[#allocation5 + $0x18] sm:$0xff]   ;;  %v536_v4 = vld [vmem:[#allocation2] sm:$0xff]   ;;  %s351_s6 = sshll.u32 %s620_s1, 4  ;;  %s352_s6 = int_to_ptr.vmem [resolvable:$true] %s351_s6 }
  0x28   :  { %476 = vmatpush3.bf16.msra.mxu0 %v528_v0  ;;  %515 = vmatpush3.bf16.msra.mxu1 %v528_v0  ;;  %v537_v5 = vld [vmem:[#allocation2 + $0x20] sm:$0xff]   ;;  %v533_v7 = vld [vmem:[#allocation5 + $0x28] sm:$0xff]   ;;  %v534_v8 = vld [vmem:[#allocation5 + $0x30] sm:$0xff]   ;;  %s588_s7 = scalar_lea.vmem %s352_s6, 1024  ;;  %p593_p3 = scmp.lt.s32.totalorder %s352_s6, %s352_s6 }
  0x29   :  { %477 = vmatprep.subr.bf16.mxu0 %v529_v1  ;;  %508 = vmatprep.subr.bf16.mxu1 %v529_v1  ;;  %v532_v6 = vld [vmem:[#allocation5 + $0x20] sm:$0xff]   ;;  %v535_v9 = vld [vmem:[#allocation5 + $0x38] sm:$0xff]   ;;  %v538_v10 = vld [vmem:[#allocation2 + $0x8] sm:$0xff]   ;;  %p589_p2 = scmp.ne.s32.totalorder %s352_s6, %s588_s7  ;;  %p594_p4 = scmp.lt.s32.totalorder %s588_s7, %s588_s7 }
  0x2a   :  { %491 = vmatprep.mubr.bf16.mxu0 %v536_v4  ;;  %499 = vmatprep.mubr.bf16.mxu1 %v537_v5  ;;  %v539_v11 = vld [vmem:[#allocation2 + $0x28] sm:$0xff]   ;;  %v540_v12 = vld [vmem:[#allocation2 + $0x10] sm:$0xff]   ;;  %v542_v14 = vld [vmem:[#allocation2 + $0x18] sm:$0xff]  }
  0x2b   :  { %v541_v13 = vld [vmem:[#allocation2 + $0x30] sm:$0xff]   ;;  %v543_v15 = vld [vmem:[#allocation2 + $0x38] sm:$0xff]   ;;  %p595_p5 = por %p594_p4, %p593_p3 }
  0x2c   :  { %478 = vmatpush3.bf16.msra.mxu0 %v529_v1  ;;  %516 = vmatpush3.bf16.msra.mxu1 %v529_v1 }
  0x2d   :  { %479 = vmatprep.subr.bf16.mxu0 %v530_v2  ;;  %509 = vmatprep.subr.bf16.mxu1 %v530_v2  ;;  %p596_p6 = pnand %p595_p5, %p589_p2 }
  0x30   :  { %480 = vmatpush3.bf16.msra.mxu0 %v530_v2  ;;  %517 = vmatpush3.bf16.msra.mxu1 %v530_v2 }
  0x31   :  { %481 = vmatprep.subr.bf16.mxu0 %v531_v3  ;;  %510 = vmatprep.subr.bf16.mxu1 %v531_v3 }
  0x34   :  { %482 = vmatpush3.bf16.msra.mxu0 %v531_v3  ;;  %518 = vmatpush3.bf16.msra.mxu1 %v531_v3 }
  0x35   :  { %483 = vmatprep.subr.bf16.mxu0 %v532_v6  ;;  %511 = vmatprep.subr.bf16.mxu1 %v532_v6 }
  0x38   :  { %484 = vmatpush3.bf16.msra.mxu0 %v532_v6  ;;  %519 = vmatpush3.bf16.msra.mxu1 %v532_v6 }
  0x39   :  { %485 = vmatprep.subr.bf16.mxu0 %v533_v7  ;;  %512 = vmatprep.subr.bf16.mxu1 %v533_v7 }
  0x3c   :  { %486 = vmatpush3.bf16.msra.mxu0 %v533_v7  ;;  %520 = vmatpush3.bf16.msra.mxu1 %v533_v7 }
  0x3d   :  { %487 = vmatprep.subr.bf16.mxu0 %v534_v8  ;;  %513 = vmatprep.subr.bf16.mxu1 %v534_v8 }
  0x40   :  { %488 = vmatpush3.bf16.msra.mxu0 %v534_v8  ;;  %521 = vmatpush3.bf16.msra.mxu1 %v534_v8 }
  0x41   :  { %489 = vmatprep.subr.bf16.mxu0 %v535_v9  ;;  %514 = vmatprep.subr.bf16.mxu1 %v535_v9 }
  0x44   :  { %490 = vmatpush3.bf16.msra.mxu0 %v535_v9  ;;  %522 = vmatpush3.bf16.msra.mxu1 %v535_v9 }
  0x47   :  { %492 = vmatmul.mubr.bf16.vlgmr.msra.gmra.mrb[0].mxu0 %v538_v10  ;;  %500 = vmatmul.mubr.bf16.vlgmr.msra.gmra.mrb[0].mxu1 %v539_v11 }
  0x48   :  { %495 = vmatprep.mubr.bf16.mxu0 %v540_v12  ;;  %503 = vmatprep.mubr.bf16.mxu1 %v541_v13 }
  0x4f   :  { %496 = vmatmul.mubr.bf16.gmra.mrb[4].mxu0 %v542_v14  ;;  %504 = vmatmul.mubr.bf16.gmra.mrb[4].mxu1 %v543_v15 }
 0x11a   :  { %v493_v16 = vpop.f32.mrb[0].mxu0  ;;  %v501_v17 = vpop.f32.mrb[0].mxu1 }
 0x11b   :  { %v203_v18 = vpop.f32.mrb[1].mxu0  ;;  %v235_v19 = vpop.f32.mrb[1].mxu1 }
 0x11c   :  { %v494_v20 = vpop.f32.mrb[2].mxu0  ;;  %v502_v21 = vpop.f32.mrb[2].mxu1 }
 0x11d   :  { %v420_v22 = vpack.c.bf16 %v494_v20, %v493_v16  ;;  %v440_v23 = vpack.c.bf16 %v502_v21, %v501_v17  ;;  %v206_v24 = vpop.f32.mrb[3].mxu0  ;;  %v238_v25 = vpop.f32.mrb[3].mxu1 }
 0x11e   :  { %v415_v26 = vpack.c.bf16 %v206_v24, %v203_v18  ;;  %v435_v27 = vpack.c.bf16 %v238_v25, %v235_v19 }
 0x11f   :  { %452 = vst [vmem:[#allocation7 + $0x8] sm:$0xff] %v420_v22   ;;  %456 = vst [vmem:[#allocation7 + $0x28] sm:$0xff] %v440_v23  }
 0x120   :  { %416 = vst [vmem:[#allocation7] sm:$0xff] %v415_v26   ;;  %455 = vst [vmem:[#allocation7 + $0x20] sm:$0xff] %v435_v27  }
 0x122   :  { %v497_v28 = vpop.f32.mrb[4].mxu0  ;;  %v505_v29 = vpop.f32.mrb[4].mxu1 }
 0x123   :  { %v219_v30 = vpop.f32.mrb[5].mxu0  ;;  %v251_v31 = vpop.f32.mrb[5].mxu1 }
 0x124   :  { %v498_v32 = vpop.f32.mrb[6].mxu0  ;;  %v506_v33 = vpop.f32.mrb[6].mxu1 }
 0x125   :  { %v430_v34 = vpack.c.bf16 %v498_v32, %v497_v28  ;;  %v450_v35 = vpack.c.bf16 %v506_v33, %v505_v29  ;;  %v222_v36 = vpop.f32.mrb[7].mxu0  ;;  %v254_v37 = vpop.f32.mrb[7].mxu1 }
 0x126   :  { %v425_v38 = vpack.c.bf16 %v222_v36, %v219_v30  ;;  %v445_v39 = vpack.c.bf16 %v254_v37, %v251_v31 }
 0x127   :  { %454 = vst [vmem:[#allocation7 + $0x18] sm:$0xff] %v430_v34   ;;  %458 = vst [vmem:[#allocation7 + $0x38] sm:$0xff] %v450_v35  }
 0x128   :  { %453 = vst [vmem:[#allocation7 + $0x10] sm:$0xff] %v425_v38   ;;  %457 = vst [vmem:[#allocation7 + $0x30] sm:$0xff] %v445_v39  }
 0x129   :  { %599 = shalt.err (!%p596_p6)
}
 0x12a   :  { %s600_s10 = scalar_lea.hbm %s683_s2, 1024 }
 0x12b   :  { %p601_p7 = scmp.ne.s32.totalorder %s683_s2, %s600_s10  ;;  %p604_p8 = scmp.lt.u32.totalorder %s600_s10, %s683_s2 }
 0x12d   :  { %p606_p9 = pnand %p604_p8, %p601_p7 }
 0x12f   :  { %609 = shalt.err (!%p606_p9)
}
 0x130   :  { %357 = dma.vmem_to_hbm [thread:$0]  %s352_s6, 1024, %s683_s2, [#allocation4], %s617_s19, %s617_s19, %s618_s20  }
 0x131   :  { %614 = dma.done.wait [#allocation4], 1024  }
 0x132   :  { %615 = vsyncadd [#allocation4], 4294966272 }
 0x133   :  { %361 = vsyncpa [#allocation3], 1 }
 0x134   :  { %362 = vsyncpa [#allocation6], 1 }
 0x135   :  { %363 = vsyncpa [#allocation4], 1 }

</bundles_post_ra>
